<compile_context>
chip_gen: v7x
topology: tpu7x:2x2x1
jax: 0.10.0
libtpu: 0.0.40
codegen_flags: <defaults>
</compile_context>

<pallas_src>
import functools

import jax
import jax.numpy as jnp
from jax import lax
from jax.experimental import pallas as pl
from jax.experimental.pallas import tpu as pltpu


def _packed_ce_kernel(lengths_ref, pred_ref, tgt_ref, nll_ref, m_sc, l_sc, t_sc,
                      *, vocab, mask_tail):
    b = pl.program_id(0)
    ti = pl.program_id(1)
    vi = pl.program_id(2)
    n_v = pl.num_programs(2)

    tT = pred_ref.shape[1]
    tV = pred_ref.shape[2]

    length = lengths_ref[b]
    tile_start = ti * tT
    tile_active = tile_start < length            # any valid token in this T-tile?

    @pl.when(vi == 0)
    def _init():
        m_sc[...] = jnp.full_like(m_sc, -jnp.inf)
        l_sc[...] = jnp.zeros_like(l_sc)
        t_sc[...] = jnp.zeros_like(t_sc)

    @pl.when(tile_active)
    def _update():
        x = pred_ref[0]                                        # (tT, tV), native dtype
        # Local column ids as a (1, tV) row; shift the target into this V-tile's local
        # frame instead of adding vi*tV to a full (tT, tV) iota (VALU trim for v7x).
        col = lax.broadcasted_iota(jnp.int32, (1, tV), 1)
        tgt_local = tgt_ref[0] - vi * tV                       # (tT, 1)
        hit = col == tgt_local                                 # (tT, tV) via broadcast

        if mask_tail:
            # Non-divisor vocab: the last V-tile overhangs the array; exclude those
            # columns from max / sum-exp. `hit` needs no fix since targets are < vocab.
            lane_valid = col < (vocab - vi * tV)               # (1, tV)
            x = jnp.where(lane_valid, x, jnp.asarray(-jnp.inf, x.dtype))

        # Max + target select on the native dtype (bf16 -> half the VALU slots on
        # v6e/v7x); both are exact after the f32 cast (single nonzero / exact bf16 max).
        tile_max = jnp.max(x, axis=-1, keepdims=True).astype(jnp.float32)
        t_hit = jnp.sum(jnp.where(hit, x, jnp.asarray(0, x.dtype)),
                        axis=-1, keepdims=True).astype(jnp.float32)

        m_prev = m_sc[...]                                     # (tT, 1)
        m_new = jnp.maximum(m_prev, tile_max)
        xf = x.astype(jnp.float32)                             # f32 only for exp path
        l_sc[...] = l_sc[...] * jnp.exp(m_prev - m_new) + jnp.sum(
            jnp.exp(xf - m_new), axis=-1, keepdims=True)
        t_sc[...] += t_hit
        m_sc[...] = m_new

    @pl.when(vi == n_v - 1)
    def _finalize():
        row = lax.broadcasted_iota(jnp.int32, (tT, 1), 0) + tile_start
        nll = m_sc[...] + jnp.log(l_sc[...]) - t_sc[...]       # (tT, 1) per-token NLL
        # Fully padded tiles never ran _update (nll is -inf there); the select below
        # replaces it with 0. Keep this a select — arithmetic masking would propagate it.
        valid = jnp.logical_and(row < length, tile_active)
        nll_ref[0] = jnp.where(valid, nll, 0.0)


def _pick_tiles(T, V, itemsize, block_budget_bytes, tile_t, tile_v):
    """Joint, dtype-aware tile pick against a VMEM byte budget for the pred block."""
    if tile_t is None:
        # Multiples of 8; for sub-32-bit dtypes prefer >=16 (native (16,128) packing).
        cands = (512, 256, 128, 64, 32, 16) if itemsize < 4 else (512, 256, 128, 64, 32, 16, 8)
        tile_t = next((c for c in cands if T % c == 0), T)
    if tile_v is None:
        # The pipeline double-buffers the pred block; keep one block <= the budget.
        max_tv = max(block_budget_bytes // (tile_t * itemsize), 128)
        tile_v = V if V <= max_tv else (max_tv // 128) * 128
    return tile_t, tile_v


def packed_cross_entropy_loss(predictions, targets, lengths, *,
                              tile_t=None, tile_v=None,
                              block_budget_bytes=4 * 1024 * 1024,
                              vmem_limit_bytes=32 * 1024 * 1024):
    """predictions: (B, T, V) float (any dtype); targets: (B, T) int; lengths: (B,) int."""
    B, T, V = predictions.shape
    itemsize = jnp.dtype(predictions.dtype).itemsize
    tT, tV = _pick_tiles(T, V, itemsize, block_budget_bytes, tile_t, tile_v)
    n_t = T // tT                      # tT divides T (or equals it) by construction
    n_v = -(-V // tV)                  # cdiv: last V-tile may overhang -> tail masking
    mask_tail = (V % tV) != 0

    targets3 = targets.astype(jnp.int32).reshape(B, T, 1)
    lengths = lengths.astype(jnp.int32)

    def _n_active_tiles(lens, b):
        return lax.div(lens[b] + (tT - 1), jnp.int32(tT))

    def pred_index_map(b, t, v, lens):
        # Data-dependent clamp: fully padded T-tiles return the block index of the last
        # block that was actually fetched, so Pallas elides the HBM->VMEM DMA entirely
        # (the kernel also skips compute for those tiles via pl.when).
        n_active = _n_active_tiles(lens, b)
        last_t = jnp.maximum(n_active - 1, 0)
        t_idx = jnp.minimum(t, last_t)
        v_idx = jnp.where(t < n_active, v, n_v - 1)
        return (b, t_idx, v_idx)

    def tgt_index_map(b, t, v, lens):
        n_active = _n_active_tiles(lens, b)
        return (b, jnp.minimum(t, jnp.maximum(n_active - 1, 0)), 0)

    kernel = functools.partial(_packed_ce_kernel, vocab=V, mask_tail=mask_tail)

    nll = pl.pallas_call(
        kernel,
        out_shape=jax.ShapeDtypeStruct((B, T, 1), jnp.float32),
        grid_spec=pltpu.PrefetchScalarGridSpec(
            num_scalar_prefetch=1,
            grid=(B, n_t, n_v),
            in_specs=[
                pl.BlockSpec((1, tT, tV), pred_index_map),
                pl.BlockSpec((1, tT, 1), tgt_index_map),
            ],
            out_specs=pl.BlockSpec((1, tT, 1), lambda b, t, v, lens: (b, t, 0)),
            scratch_shapes=[
                pltpu.VMEM((tT, 1), jnp.float32),   # running max
                pltpu.VMEM((tT, 1), jnp.float32),   # running sum-exp
                pltpu.VMEM((tT, 1), jnp.float32),   # running target logit
            ],
        ),
        compiler_params=pltpu.CompilerParams(
            # B and T_tiles parallel (megacore sharding on v7x), V reduction arbitrary.
            dimension_semantics=("parallel", "parallel", "arbitrary"),
            vmem_limit_bytes=vmem_limit_bytes,
        ),
    )(lengths, predictions, targets3)

    # Valid-token count straight from lengths; padded positions are already zeroed.
    # (All-zero lengths would divide by zero, but PyTorch's pack_padded_sequence
    #  rejects zero lengths, so that input is outside the reference semantics.)
    count = jnp.sum(jnp.clip(lengths, 0, T).astype(jnp.float32))
    return jnp.sum(nll) / count


def _reference_loss(predictions, targets, lengths):
    T = predictions.shape[1]
    logp = jax.nn.log_softmax(predictions.astype(jnp.float32), axis=-1)
    tok_nll = -jnp.take_along_axis(logp, targets[..., None].astype(jnp.int32), axis=-1)[..., 0]
    mask = (jnp.arange(T)[None, :] < lengths[:, None]).astype(jnp.float32)
    return jnp.sum(tok_nll * mask) / jnp.sum(mask)


if __name__ == "__main__":
    key = jax.random.PRNGKey(0)

    # --- test 1: small f32 shapes implied by the module (B=2, T=8, V=32) ---
    B, T, V = 2, 8, 32
    k1, k2 = jax.random.split(key)
    preds = jax.random.normal(k1, (B, T, V), dtype=jnp.float32)
    tgts = jax.random.randint(k2, (B, T), 0, V, dtype=jnp.int32)
    lens = jnp.array([8, 5], dtype=jnp.int32)
    loss = packed_cross_entropy_loss(preds, tgts, lens)
    jax.block_until_ready(loss)
    ref = _reference_loss(preds, tgts, lens)
    assert jnp.allclose(loss, ref, rtol=1e-5, atol=1e-5), (loss, ref)

    # --- test 2: native bf16 predictions (cast to f32 only inside the kernel) ---
    loss_bf16 = packed_cross_entropy_loss(preds.astype(jnp.bfloat16), tgts, lens)
    jax.block_until_ready(loss_bf16)
    ref_bf16 = _reference_loss(preds.astype(jnp.bfloat16), tgts, lens)
    assert jnp.allclose(loss_bf16, ref_bf16, rtol=1e-3, atol=1e-3), (loss_bf16, ref_bf16)

    # --- test 3: non-divisor vocab (tail masking), multiple V-tiles (online LSE), and
    #             a fully padded T-tile (exercises the DMA-skip index_map clamp path) ---
    B2, T2, V2 = 2, 16, 200
    k3, k4 = jax.random.split(k1)
    preds2 = jax.random.normal(k3, (B2, T2, V2), dtype=jnp.float32)
    tgts2 = jax.random.randint(k4, (B2, T2), 0, V2, dtype=jnp.int32)
    lens2 = jnp.array([16, 5], dtype=jnp.int32)
    loss2 = packed_cross_entropy_loss(preds2, tgts2, lens2, tile_t=8, tile_v=128)
    jax.block_until_ready(loss2)
    ref2 = _reference_loss(preds2, tgts2, lens2)
    assert jnp.allclose(loss2, ref2, rtol=1e-5, atol=1e-5), (loss2, ref2)

    print("KERNEL_OK")
</pallas_src>

<mosaic_0001>
module attributes {stable_mosaic.version = 11 : i64} {
  func.func @_packed_ce_kernel(%arg0: i32, %arg1: i32, %arg2: i32, %arg3: memref<2xi32, #tpu.memory_space<smem>>, %arg4: memref<1x8x32xf32, #tpu.memory_space<vmem>>, %arg5: memref<1x8x1xi32, #tpu.memory_space<vmem>>, %arg6: memref<1x8x1xf32, #tpu.memory_space<vmem>>, %arg7: memref<8x1xf32, #tpu.memory_space<vmem>>, %arg8: memref<8x1xf32, #tpu.memory_space<vmem>>, %arg9: memref<8x1xf32, #tpu.memory_space<vmem>>) attributes {dimension_semantics = [#tpu.dimension_semantics<parallel>, #tpu.dimension_semantics<parallel>, #tpu.dimension_semantics<arbitrary>], iteration_bounds = array<i64: 2, 1, 1>, scalar_prefetch = 1 : i64, scratch_operands = 3 : i64, tpu.core_type = #tpu.core_type<tc>, window_params = [{transform_indices = @transform_0, window_bounds = array<i64: 1, 8, 32>}, {transform_indices = @transform_1, window_bounds = array<i64: 1, 8, 1>}, {transform_indices = @transform_2, window_bounds = array<i64: 1, 8, 1>}]} {
    %0 = arith.index_cast %arg0 : i32 to index
    %1 = memref.load %arg3[%0] : memref<2xi32, #tpu.memory_space<smem>>
    %c8_i32 = arith.constant 8 : i32
    %2 = arith.muli %arg1, %c8_i32 : i32
    %3 = arith.cmpi slt, %2, %1 : i32
    %c0_i32 = arith.constant 0 : i32
    %4 = arith.cmpi eq, %arg2, %c0_i32 : i32
    %5 = arith.extui %4 : i1 to i32
    %c0_i32_0 = arith.constant 0 : i32
    %6 = arith.cmpi ne, %5, %c0_i32_0 : i32
    scf.if %6 {
      %cst = arith.constant 0xFF800000 : f32
      %12 = vector.broadcast %cst : f32 to vector<8x1xf32>
      %c0 = arith.constant 0 : index
      %c0_4 = arith.constant 0 : index
      %13 = vector.load %arg7[%c0, %c0_4] : memref<8x1xf32, #tpu.memory_space<vmem>>, vector<8x1xf32>
      tpu.vector_store %arg7[%c0, %c0_4], %12 {strides = array<i32>} : memref<8x1xf32, #tpu.memory_space<vmem>>, vector<8x1xf32>,
      %cst_5 = arith.constant 0.000000e+00 : f32
      %14 = vector.broadcast %cst_5 : f32 to vector<8x1xf32>
      %c0_6 = arith.constant 0 : index
      %c0_7 = arith.constant 0 : index
      %15 = vector.load %arg8[%c0_6, %c0_7] : memref<8x1xf32, #tpu.memory_space<vmem>>, vector<8x1xf32>
      tpu.vector_store %arg8[%c0_6, %c0_7], %14 {strides = array<i32>} : memref<8x1xf32, #tpu.memory_space<vmem>>, vector<8x1xf32>,
      %cst_8 = arith.constant 0.000000e+00 : f32
      %16 = vector.broadcast %cst_8 : f32 to vector<8x1xf32>
      %c0_9 = arith.constant 0 : index
      %c0_10 = arith.constant 0 : index
      %17 = vector.load %arg9[%c0_9, %c0_10] : memref<8x1xf32, #tpu.memory_space<vmem>>, vector<8x1xf32>
      tpu.vector_store %arg9[%c0_9, %c0_10], %16 {strides = array<i32>} : memref<8x1xf32, #tpu.memory_space<vmem>>, vector<8x1xf32>,
    } else {
    }
    %7 = arith.extui %3 : i1 to i32
    %c0_i32_1 = arith.constant 0 : i32
    %8 = arith.cmpi ne, %7, %c0_i32_1 : i32
    scf.if %8 {
      %c0 = arith.constant 0 : index
      %c0_4 = arith.constant 0 : index
      %c0_5 = arith.constant 0 : index
      %12 = vector.load %arg4[%c0, %c0_4, %c0_5] : memref<1x8x32xf32, #tpu.memory_space<vmem>>, vector<1x8x32xf32>
      %13 = vector.shape_cast %12 : vector<1x8x32xf32> to vector<8x32xf32>
      %14 = tpu.iota {dimensions = array<i32: 1>} : vector<1x32xi32>
      %c0_6 = arith.constant 0 : index
      %c0_7 = arith.constant 0 : index
      %c0_8 = arith.constant 0 : index
      %15 = vector.load %arg5[%c0_6, %c0_7, %c0_8] : memref<1x8x1xi32, #tpu.memory_space<vmem>>, vector<1x8x1xi32>
      %16 = vector.shape_cast %15 : vector<1x8x1xi32> to vector<8x1xi32>
      %c32_i32 = arith.constant 32 : i32
      %17 = arith.muli %arg2, %c32_i32 : i32
      %18 = vector.broadcast %17 : i32 to vector<8x1xi32>
      %19 = arith.subi %16, %18 : vector<8x1xi32>
      %20 = vector.broadcast %14 : vector<1x32xi32> to vector<8x32xi32>
      %21 = vector.broadcast %19 : vector<8x1xi32> to vector<8x32xi32>
      %22 = arith.cmpi eq, %20, %21 : vector<8x32xi32>
      %cst = arith.constant dense<0xFF800000> : vector<8xf32>
      %23 = vector.multi_reduction <maximumf>, %13, %cst [1] : vector<8x32xf32> to vector<8xf32>
      %24 = vector.shape_cast %23 : vector<8xf32> to vector<8x1xf32>
      %cst_9 = arith.constant 0.000000e+00 : f32
      %25 = vector.broadcast %cst_9 : f32 to vector<8x32xf32>
      %26 = arith.select %22, %13, %25 : vector<8x32xi1>, vector<8x32xf32>
      %cst_10 = arith.constant dense<0.000000e+00> : vector<8xf32>
      %27 = vector.multi_reduction <add>, %26, %cst_10 [1] : vector<8x32xf32> to vector<8xf32>
      %28 = vector.shape_cast %27 : vector<8xf32> to vector<8x1xf32>
      %c0_11 = arith.constant 0 : index
      %c0_12 = arith.constant 0 : index
      %29 = vector.load %arg7[%c0_11, %c0_12] : memref<8x1xf32, #tpu.memory_space<vmem>>, vector<8x1xf32>
      %30 = arith.maximumf %29, %24 : vector<8x1xf32>
      %c0_13 = arith.constant 0 : index
      %c0_14 = arith.constant 0 : index
      %31 = vector.load %arg8[%c0_13, %c0_14] : memref<8x1xf32, #tpu.memory_space<vmem>>, vector<8x1xf32>
      %32 = arith.subf %29, %30 : vector<8x1xf32>
      %33 = math.exp %32 : vector<8x1xf32>
      %34 = arith.mulf %31, %33 : vector<8x1xf32>
      %35 = vector.broadcast %30 : vector<8x1xf32> to vector<8x32xf32>
      %36 = arith.subf %13, %35 : vector<8x32xf32>
      %37 = math.exp %36 : vector<8x32xf32>
      %cst_15 = arith.constant dense<0.000000e+00> : vector<8xf32>
      %38 = vector.multi_reduction <add>, %37, %cst_15 [1] : vector<8x32xf32> to vector<8xf32>
      %39 = vector.shape_cast %38 : vector<8xf32> to vector<8x1xf32>
      %40 = arith.addf %34, %39 : vector<8x1xf32>
      %c0_16 = arith.constant 0 : index
      %c0_17 = arith.constant 0 : index
      %41 = vector.load %arg8[%c0_16, %c0_17] : memref<8x1xf32, #tpu.memory_space<vmem>>, vector<8x1xf32>
      tpu.vector_store %arg8[%c0_16, %c0_17], %40 {strides = array<i32>} : memref<8x1xf32, #tpu.memory_space<vmem>>, vector<8x1xf32>,
      %c0_18 = arith.constant 0 : index
      %c0_19 = arith.constant 0 : index
      %42 = vector.load %arg9[%c0_18, %c0_19] : memref<8x1xf32, #tpu.memory_space<vmem>>, vector<8x1xf32>
      %43 = arith.addf %42, %28 : vector<8x1xf32>
      %c0_20 = arith.constant 0 : index
      %c0_21 = arith.constant 0 : index
      %44 = vector.load %arg9[%c0_20, %c0_21] : memref<8x1xf32, #tpu.memory_space<vmem>>, vector<8x1xf32>
      tpu.vector_store %arg9[%c0_20, %c0_21], %43 {strides = array<i32>} : memref<8x1xf32, #tpu.memory_space<vmem>>, vector<8x1xf32>,
      %c0_22 = arith.constant 0 : index
      %c0_23 = arith.constant 0 : index
      %45 = vector.load %arg7[%c0_22, %c0_23] : memref<8x1xf32, #tpu.memory_space<vmem>>, vector<8x1xf32>
      tpu.vector_store %arg7[%c0_22, %c0_23], %30 {strides = array<i32>} : memref<8x1xf32, #tpu.memory_space<vmem>>, vector<8x1xf32>,
    } else {
    }
    %c0_i32_2 = arith.constant 0 : i32
    %9 = arith.cmpi eq, %arg2, %c0_i32_2 : i32
    %10 = arith.extui %9 : i1 to i32
    %c0_i32_3 = arith.constant 0 : i32
    %11 = arith.cmpi ne, %10, %c0_i32_3 : i32
    scf.if %11 {
      %12 = tpu.iota {dimensions = array<i32: 0>} : vector<8x1xi32>
      %13 = vector.broadcast %2 : i32 to vector<8x1xi32>
      %14 = arith.addi %12, %13 : vector<8x1xi32>
      %c0 = arith.constant 0 : index
      %c0_4 = arith.constant 0 : index
      %15 = vector.load %arg7[%c0, %c0_4] : memref<8x1xf32, #tpu.memory_space<vmem>>, vector<8x1xf32>
      %c0_5 = arith.constant 0 : index
      %c0_6 = arith.constant 0 : index
      %16 = vector.load %arg8[%c0_5, %c0_6] : memref<8x1xf32, #tpu.memory_space<vmem>>, vector<8x1xf32>
      %17 = math.log %16 : vector<8x1xf32>
      %18 = arith.addf %15, %17 : vector<8x1xf32>
      %c0_7 = arith.constant 0 : index
      %c0_8 = arith.constant 0 : index
      %19 = vector.load %arg9[%c0_7, %c0_8] : memref<8x1xf32, #tpu.memory_space<vmem>>, vector<8x1xf32>
      %20 = arith.subf %18, %19 : vector<8x1xf32>
      %21 = vector.broadcast %1 : i32 to vector<8x1xi32>
      %22 = arith.cmpi slt, %14, %21 : vector<8x1xi32>
      %23 = vector.broadcast %3 : i1 to vector<8x1xi1>
      %24 = arith.andi %22, %23 : vector<8x1xi1>
      %cst = arith.constant 0.000000e+00 : f32
      %25 = vector.broadcast %cst : f32 to vector<8x1xf32>
      %26 = arith.select %24, %20, %25 : vector<8x1xi1>, vector<8x1xf32>
      %c0_9 = arith.constant 0 : index
      %c0_10 = arith.constant 0 : index
      %c0_11 = arith.constant 0 : index
      %27 = vector.load %arg6[%c0_9, %c0_10, %c0_11] : memref<1x8x1xf32, #tpu.memory_space<vmem>>, vector<1x8x1xf32>
      %28 = vector.shape_cast %27 : vector<1x8x1xf32> to vector<8x1xf32>
      %29 = vector.shape_cast %26 : vector<8x1xf32> to vector<1x8x1xf32>
      tpu.vector_store %arg6[%c0_9, %c0_10, %c0_11], %29 {strides = array<i32>} : memref<1x8x1xf32, #tpu.memory_space<vmem>>, vector<1x8x1xf32>,
    } else {
    }
    return
  }
  func.func @transform_0(%arg0: i32, %arg1: i32, %arg2: i32, %arg3: memref<2xi32, #tpu.memory_space<smem>>) -> (i32, i32, i32) {
    %0 = arith.index_cast %arg0 : i32 to index
    %1 = memref.load %arg3[%0] : memref<2xi32, #tpu.memory_space<smem>>
    %c7_i32 = arith.constant 7 : i32
    %2 = arith.addi %1, %c7_i32 : i32
    %c8_i32 = arith.constant 8 : i32
    %3 = arith.divsi %2, %c8_i32 : i32
    %c1_i32 = arith.constant 1 : i32
    %4 = arith.subi %3, %c1_i32 : i32
    %c0_i32 = arith.constant 0 : i32
    %5 = arith.maxsi %4, %c0_i32 : i32
    %6 = arith.minsi %arg1, %5 : i32
    %7 = arith.cmpi slt, %arg1, %3 : i32
    %c0_i32_0 = arith.constant 0 : i32
    %8 = arith.select %7, %arg2, %c0_i32_0 : i32
    %c0_i32_1 = arith.constant 0 : i32
    return %arg0, %6, %8 : i32, i32, i32
  }
  func.func @transform_1(%arg0: i32, %arg1: i32, %arg2: i32, %arg3: memref<2xi32, #tpu.memory_space<smem>>) -> (i32, i32, i32) {
    %0 = arith.index_cast %arg0 : i32 to index
    %1 = memref.load %arg3[%0] : memref<2xi32, #tpu.memory_space<smem>>
    %c7_i32 = arith.constant 7 : i32
    %2 = arith.addi %1, %c7_i32 : i32
    %c8_i32 = arith.constant 8 : i32
    %3 = arith.divsi %2, %c8_i32 : i32
    %c1_i32 = arith.constant 1 : i32
    %4 = arith.subi %3, %c1_i32 : i32
    %c0_i32 = arith.constant 0 : i32
    %5 = arith.maxsi %4, %c0_i32 : i32
    %6 = arith.minsi %arg1, %5 : i32
    %c0_i32_0 = arith.constant 0 : i32
    %c0_i32_1 = arith.constant 0 : i32
    return %arg0, %6, %c0_i32_0 : i32, i32, i32
  }
  func.func @transform_2(%arg0: i32, %arg1: i32, %arg2: i32, %arg3: memref<2xi32, #tpu.memory_space<smem>>) -> (i32, i32, i32) {
    %c0_i32 = arith.constant 0 : i32
    %c0_i32_0 = arith.constant 0 : i32
    return %arg0, %arg1, %c0_i32 : i32, i32, i32
  }
}

</mosaic_0001>

<bundles_post_ra>
// kernel: tpu_custom_call.1
= control target key start
LH: loop header
LB: loop body
LE: loop exit
PB: predicated region body
PF: predicated region fallthrough
CT: control target
= control target key end

     0   :  { %s826_s0 = inlined_call_operand.vmem [shape: s32[2], index: 0, kind: input, shape index: {}]   ;;  %s827_s1 = inlined_call_operand.vmem [shape: f32[2,8,32], index: 1, kind: input, shape index: {}]   ;;  %s828_s2 = inlined_call_operand.vmem [shape: s32[2,8,1], index: 2, kind: input, shape index: {}]   ;;  %s829_s3 = inlined_call_operand.vmem [shape: f32[2,8,1], index: 3, kind: output, shape index: {}]  }
   0x1   :  { %s8_s14 = sshll.u32 %s826_s0, 4  ;;  %s9_s14 = int_to_ptr.vmem [resolvable:$true] %s8_s14 }
   0x2   :  { %s698_s15 = scalar_lea.vmem %s9_s14, 16  ;;  %p703_p1 = scmp.lt.s32.totalorder %s9_s14, %s9_s14 }
   0x3   :  { %p699_p0 = scmp.ne.s32.totalorder %s9_s14, %s698_s15  ;;  %p704_p2 = scmp.lt.s32.totalorder %s698_s15, %s698_s15 }
   0x5   :  { %p705_p3 = por %p704_p2, %p703_p1 }
   0x7   :  { %p706_p4 = pnand %p705_p3, %p699_p0 }
   0x9   :  { %709 = shalt.err (!%p706_p4)  }
   0xa   :  { %s736_s16 = smov [#allocation6]  }
   0xb   :  { %11 = dma.vmem_to_smem %s9_s14, 16, %s736_s16, [#allocation5] }
   0xc   :  { %722 = dma.done.wait [#allocation5], 16 }
   0xd   :  { %723 = vsyncadd [#allocation5], 4294967280 }
   0xe   :  { %13 = sfence }
   0xf   :  { %s763_s17 = smov 0   ;;  %s765_s18 = smov 0  }
  0x10   :  { %s767_s19 = smov 0  }
  0x11 LB: > { %s38_s0 = sadd.s32 1, %s730_s18  ;;  %p613_p5 = scmp.ge.s32.totalorder %s734_s19, 1  ;;  %s734_s19 = sphi %s767_s19, %s19_s19   ;;  %s730_s18 = sphi %s765_s18, %s831_s18   ;;  %s726_s17 = sphi %s763_s17, %s830_s17  }
  0x12   : > { %p40_p6 = scmp.ge.s32.totalorder %s38_s0, 2  ;;  %p275_p7 = scmp.lt.s32.totalorder %s734_s19, 3 }
  0x14   : > { %s833_s0 = smov (%p40_p6, %s38_s0), 0  ;;  %p276_p8 = pnand %p613_p5, %p275_p7 }
  0x15   : > { %p354_p9 = scmp.lt.s32.totalorder (!%p276_p8), %s726_s17, 1  ;;  %s781_s20 = sld [smem:[#allocation6 + %s726_s17]] (!%p276_p8)  ;;  %vm426_vm0 = vcmask (!%p276_p8), 7168   ;;  %v737_v0 = vmov (!%p276_p8), -inf   ;;  %v738_v1 = vmov (!%p276_p8), 0.0  }
  0x16   : > { %279 = sbr.rel (%p276_p8) target bundleno = 493 (0x1ed), region = 28  ;;  %427 = vst.msk [vmem:[#allocation2] sm:$0xff] (!%p276_p8), %vm426_vm0, %v737_v0  ;;  %428 = vst.msk [vmem:[#allocation3] sm:$0xff] (!%p276_p8), %vm426_vm0, %v738_v1 }
  0x17   : > { %429 = vst.msk [vmem:[#allocation4] sm:$0xff] (!%p276_p8), %vm426_vm0, %v738_v1 }
  0x1b   : > { %p630_p10 = scmp.gt.s32.totalorder (!%p276_p8), %s781_s20, 0  ;;  %p631_p11 = scmp.le.s32.totalorder (!%p276_p8), %s781_s20, 0 }
  0x1d   : > { %s835_s17 = smov (!%p354_p9, %s726_s17), 1  ;;  %432 = sbr.rel (%p631_p11) target bundleno = 467 (0x1d3), region = 36 }
  0x1e   : > { %s786_s21 = sshll.u32 %s835_s17, 3  ;;  %vm444_vm1 = vcmask (!%p631_p11), 261120   ;;  %v739_v4 = vmov (!%p631_p11), 0   ;;  %v452_v6 = vld [vmem:[#allocation2] sm:$0xff] (!%p631_p11)  ;;  %v434_v10 = vlaneseq (!%p631_p11)  ;;  %v473_v20 = vld [vmem:[#allocation4] sm:$0xff] (!%p631_p11)  ;;  %v454_v25 = vld [vmem:[#allocation3] sm:$0xff] (!%p631_p11) }
  0x1f   : > { %s363_s24 = scalar_lea.vmem %s827_s1, %s786_s21  ;;  %s398_s27 = scalar_lea.vmem %s828_s2, %s786_s21  ;;  %690 = vset.pattern.permute.xlu0 (!%p631_p11), %v739_v4  ;;  %691 = vset.pattern.permute.xlu1 (!%p631_p11), %v739_v4 }
  0x20   : > { %s418_s30 = scalar_lea.vmem %s829_s3, %s786_s21  ;;  %v433_v2 = vld [vmem:[%s363_s24] sm:$0xff] (!%p631_p11)  ;;  %v435_v12 = vand.u32 (!%p631_p11), 127, %v434_v10 }
  0x21   : > { %v445_v3 = vsel (!%p631_p11), %vm444_vm1, %v433_v2, -inf  ;;  %v436_v5 = vld [vmem:[%s398_s27] sm:$0xff] (!%p631_p11) }
  0x22   : > { %446 = vmax.xlane.f32.xlu0 (!%p631_p11), %v445_v3  ;;  %441 = vperm.xlu1 (!%p631_p11), %691, %v436_v5  }
  0xa1   : > { %v442_v11 = vpop.permute.xlu1 %441 }
  0xa2   : > { %vm443_vm2 = vcmp.eq.s32.totalorder %v435_v12, %v442_v11 }
  0xa3   : > { %v448_v13 = vsel %vm443_vm2, %v433_v2, 0.0 }
  0xa4   : > { %v449_v14 = vsel %vm444_vm1, %v448_v13, 0.0 }
  0xa5   : > { %450 = vadd.xlane.f32.xlu1 %v449_v14 }
  0xaf   : > { %v447_v7 = vpop.xlane.xlu0 %446 }
  0xb0   : > { %v453_v8 = vmax.f32 %v452_v6, %v447_v7 }
  0xb2   : > { %v455_v9 = vsub.f32 %v452_v6, %v453_v8  ;;  %476 = vst.msk [vmem:[#allocation2] sm:$0xff] %vm426_vm0, %v453_v8  ;;  %461 = vperm.xlu0 %690, %v453_v8  }
  0xb4   : > { %v456_v23 = vmul.f32 1.442695, %v455_v9 }
 0x131   : > { %v462_v15 = vpop.permute.xlu0 %461 }
 0x132   : > { %v464_v16 = vsub.f32 %v433_v2, %v462_v15  ;;  %v451_v21 = vpop.xlane.xlu1 %450 }
 0x133   : > { %v474_v22 = vadd.f32 %v473_v20, %v451_v21 }
 0x134   : > { %v465_v17 = vmul.f32 1.442695, %v464_v16 }
 0x135   : > { %475 = vst.msk [vmem:[#allocation4] sm:$0xff] %vm426_vm0, %v474_v22 }
 0x136   : > { %692 = vpow2.f32 %v465_v17 }
 0x137   : > { %694 = vpow2.f32 %v456_v23 }
 0x140   : > { %v693_v18 = vpop.eup %692 }
 0x141   : > { %v467_v19 = vsel %vm444_vm1, %v693_v18, 0.0  ;;  %v695_v24 = vpop.eup %694 }
 0x142   : > { %468 = vadd.xlane.f32.xlu1 %v467_v19  ;;  %v458_v26 = vmul.f32 %v695_v24, %v454_v25 }
 0x1cf   : > { %v469_v27 = vpop.xlane.xlu1 %468 }
 0x1d0   : > { %v470_v28 = vadd.f32 %v469_v27, %v458_v26 }
 0x1d2   : > { %472 = vst.msk [vmem:[#allocation3] sm:$0xff] %vm426_vm0, %v470_v28 }
 0x1d3 PF: > { %v480_v30 = vlaneseq  ;;  %s493_s4 = scalar_select %p630_p10, 1, 0  ;;  %v491_v32 = vstv %s781_s20  ;;  %v484_v35 = vld [vmem:[#allocation2] sm:$0xff]  ;;  %v489_v37 = vld [vmem:[#allocation4] sm:$0xff] }
 0x1d5   : > { %v481_v31 = vshrl.u32 %v480_v30, 7  ;;  %v494_v33 = vstv %s493_s4 }
 0x1d6   : > { %vm495_vm4 = vcmp.eq.s32.totalorder %v494_v33, 1 }
 0x1d7   : > { %vm492_vm3 = vcmp.lt.s32.totalorder %v481_v31, %v491_v32 }
 0x1d8   : > { %vm496_vm5 = vmand %vm492_vm3, %vm495_vm4 }
 0x1d9   : > { %v485_v29 = vld [vmem:[#allocation3] sm:$0xff] }
 0x1da   : > { %696 = vlog2.f32 %v485_v29 }
 0x1e4   : > { %v697_v34 = vpop.eup %696 }
 0x1e5   : > { %v487_v36 = vmul.f32 0.6931472, %v697_v34 }
 0x1e7   : > { %v488_v38 = vadd.f32 %v487_v36, %v484_v35 }
 0x1e9   : > { %v490_v39 = vsub.f32 %v488_v38, %v489_v37 }
 0x1eb   : > { %v497_v40 = vsel %vm496_vm5, %v490_v39, 0.0 }
 0x1ec   : > { %499 = vst.msk [vmem:[%s418_s30] sm:$0xff] %vm426_vm0, %v497_v40 }
 0x1ed PF: > { %s19_s19 = sadd.s32 1, %s734_s19   ;;  %s830_s17 = smov %s730_s18 }
 0x1ee   : > { %p16_p12 = scmp.ge.s32.totalorder %s19_s19, 4   ;;  %s831_s18 = smov %s833_s0 }
 0x1f0   :  { %18 = sbr.rel (!%p16_p12) target bundleno = 17 (0x11), region = 73 }

</bundles_post_ra>
